<compile_context>
chip_gen: v7x
topology: tpu7x:2x2x1
jax: 0.10.0
libtpu: 0.0.40
codegen_flags: <defaults>
</compile_context>

<pallas_src>
import jax
import jax.numpy as jnp
from jax.experimental import pallas as pl
from jax.experimental.pallas import tpu as pltpu


def _round_up(x, m):
    return ((x + m - 1) // m) * m


# ----------------------------------------------------------------------------
# Fast path: both tables VMEM-resident, per-row dynamic-index reads.
# ----------------------------------------------------------------------------
def _make_vmem_gather_kernel(n_rows):
    def kernel(ids_ref, shared_ref, soft_ref, out_ref):
        R = out_ref.shape[0]
        V = shared_ref.shape[0]
        N = soft_ref.shape[0]
        base = pl.program_id(0) * R

        for j in range(R):                       # static unroll (R modest)
            row_idx = base + j

            @pl.when(row_idx < n_rows)           # skip padded tail rows
            def _(j=j, row_idx=row_idx):
                tok = ids_ref[row_idx]           # scalar read from SMEM
                is_hard = tok < V
                # Placeholder indices (discarded side is never used; clamped
                # so even bad ids never read out of bounds).
                hard_tok = jnp.clip(jnp.where(is_hard, tok, 0), 0, V - 1)
                soft_tok = jnp.clip(tok - V, 0, N - 1)
                row_hard = shared_ref[pl.ds(hard_tok, 1), :]   # (1, H)
                row_soft = soft_ref[pl.ds(soft_tok, 1), :]     # (1, H)
                out_ref[pl.ds(j, 1), :] = jnp.where(is_hard, row_hard, row_soft)

    return kernel


# ----------------------------------------------------------------------------
# Large-table path: tables stay in HBM; one row DMA per token directly into
# the output block.  All R DMAs per step are started before any wait.
# ----------------------------------------------------------------------------
def _make_hbm_gather_kernel(n_rows):
    def kernel(ids_ref, shared_hbm, soft_hbm, out_ref, sems):
        R = out_ref.shape[0]
        V = shared_hbm.shape[0]
        N = soft_hbm.shape[0]
        base = pl.program_id(0) * R

        # Issue phase: all row gathers in flight.
        for j in range(R):
            row_idx = base + j
            tok = ids_ref[row_idx]               # scalar read from SMEM
            valid = row_idx < n_rows
            is_hard = tok < V
            hard_tok = jnp.clip(tok, 0, V - 1)
            soft_tok = jnp.clip(tok - V, 0, N - 1)

            @pl.when(valid & is_hard)
            def _(j=j, hard_tok=hard_tok):
                pltpu.make_async_copy(
                    shared_hbm.at[pl.ds(hard_tok, 1), :],
                    out_ref.at[pl.ds(j, 1), :],
                    sems.at[j]).start()

            @pl.when(valid & jnp.logical_not(is_hard))
            def _(j=j, soft_tok=soft_tok):
                pltpu.make_async_copy(
                    soft_hbm.at[pl.ds(soft_tok, 1), :],
                    out_ref.at[pl.ds(j, 1), :],
                    sems.at[j]).start()

        # Wait phase.  Both possible sources copy the same (1, H) byte count,
        # so a single wait descriptor per row (src row 0) is sufficient.
        for j in range(R):
            valid = (base + j) < n_rows

            @pl.when(valid)
            def _(j=j):
                pltpu.make_async_copy(
                    shared_hbm.at[pl.ds(0, 1), :],
                    out_ref.at[pl.ds(j, 1), :],
                    sems.at[j]).wait()

    return kernel


# ----------------------------------------------------------------------------
# Wrapper
# ----------------------------------------------------------------------------
def token_id_to_embedding(input_ids, shared_table, soft_table=None, *,
                          rows_per_step=128,
                          vmem_table_limit_bytes=8 * 1024 * 1024,
                          force_hbm_path=False,
                          core_parallel=False):
    """input_ids [B,S] int, shared_table [V,H], soft_table [N,H] -> [B,S,H].

    rows_per_step rows are gathered per grid step (statically unrolled in the
    kernel; keep it <= ~256).  Small tables use a VMEM-resident gather, large
    tables a per-row HBM DMA gather straight into the output block.
    """
    B, S = input_ids.shape
    V, H = shared_table.shape
    dtype = shared_table.dtype

    if soft_table is None or soft_table.shape[0] == 0:
        # num_soft_tokens == 0: all ids are hard; dummy 1-row soft table keeps
        # a uniform kernel signature (its branch is never taken).
        soft_table = jnp.zeros((1, H), dtype)
    soft_table = soft_table.astype(dtype)
    N = soft_table.shape[0]

    n_rows = B * S
    R = min(max(rows_per_step, 8), _round_up(n_rows, 8))
    R = _round_up(R, 8)                      # sublane-aligned output block
    total = _round_up(n_rows, R)
    ids_flat = input_ids.reshape(-1).astype(jnp.int32)
    pad = total - n_rows
    if pad:
        ids_flat = jnp.concatenate([ids_flat, jnp.zeros((pad,), jnp.int32)])
    grid = (total // R,)

    itemsize = jnp.dtype(dtype).itemsize
    table_bytes = (V + N) * H * itemsize
    use_vmem_table = (not force_hbm_path) and table_bytes <= vmem_table_limit_bytes

    row_axis = pltpu.CORE_PARALLEL if core_parallel else "parallel"
    out_spec = pl.BlockSpec((R, H), lambda r, ids: (r, 0))
    out_shape = jax.ShapeDtypeStruct((total, H), dtype)

    # Raise the scoped VMEM limit only when the output double buffer plus a
    # (conservatively double-counted) resident table would exceed the
    # smallest per-generation default (16 MiB on v5e).
    vmem_needed = 2 * R * H * itemsize + (2 * table_bytes if use_vmem_table else 0)
    compiler_kwargs = dict(dimension_semantics=(row_axis,))
    if vmem_needed > 14 * 1024 * 1024:
        compiler_kwargs["vmem_limit_bytes"] = min(
            int(vmem_needed * 1.5) + (1 << 20), 100 * 1024 * 1024)

    if use_vmem_table:
        kernel = _make_vmem_gather_kernel(n_rows)
        grid_spec = pltpu.PrefetchScalarGridSpec(
            num_scalar_prefetch=1,                 # ids -> SMEM
            grid=grid,
            in_specs=[
                pl.BlockSpec((V, H), lambda r, ids: (0, 0)),   # resident in VMEM
                pl.BlockSpec((N, H), lambda r, ids: (0, 0)),   # resident in VMEM
            ],
            out_specs=out_spec,
            scratch_shapes=[],
        )
    else:
        kernel = _make_hbm_gather_kernel(n_rows)
        grid_spec = pltpu.PrefetchScalarGridSpec(
            num_scalar_prefetch=1,                 # ids -> SMEM
            grid=grid,
            in_specs=[
                pl.BlockSpec(memory_space=pl.ANY),  # shared table stays in HBM
                pl.BlockSpec(memory_space=pl.ANY),  # soft table stays in HBM
            ],
            out_specs=out_spec,
            scratch_shapes=[pltpu.SemaphoreType.DMA((R,))],
        )

    out = pl.pallas_call(
        kernel,
        out_shape=out_shape,
        grid_spec=grid_spec,
        compiler_params=pltpu.CompilerParams(**compiler_kwargs),
    )(ids_flat, shared_table, soft_table)

    return out[:n_rows].reshape(B, S, H)


def token_id_to_embedding_ref(input_ids, shared_table, soft_table):
    """Plain-JAX reference mirroring the PyTorch semantics."""
    V, _ = shared_table.shape
    is_hard = input_ids < V
    hard_ids = jnp.where(is_hard, input_ids, 2)
    soft_ids = jnp.where(is_hard, 0, input_ids - V)
    raw = jnp.take(shared_table, hard_ids, axis=0)
    new = jnp.take(soft_table, soft_ids, axis=0)
    return jnp.where(is_hard[..., None], raw, new)


if __name__ == "__main__":
    # Small deterministic setup consistent with the module:
    #   vocab_size = 128, tokenizer_size = 136 -> num_soft_tokens = 8
    #   hidden_size H = 32, batch B = 2, seq S = 8
    B, S, H = 2, 8, 32
    VOCAB = 128
    NUM_SOFT = 8
    TOKENIZER = VOCAB + NUM_SOFT

    key = jax.random.PRNGKey(0)
    k_shared, k_soft, k_ids = jax.random.split(key, 3)

    shared_table = jax.random.normal(k_shared, (VOCAB, H), dtype=jnp.float32)
    soft_table = jax.random.normal(k_soft, (NUM_SOFT, H), dtype=jnp.float32)
    # ids span both hard ([0, VOCAB)) and soft ([VOCAB, TOKENIZER)) ranges
    input_ids = jax.random.randint(k_ids, (B, S), 0, TOKENIZER, dtype=jnp.int32)

    ref = token_id_to_embedding_ref(input_ids, shared_table, soft_table)

    # Fast path (table is ~17 KB -> VMEM-resident gather).
    out_vmem = jax.block_until_ready(
        token_id_to_embedding(input_ids, shared_table, soft_table))
    assert out_vmem.shape == (B, S, H)
    assert jnp.array_equal(out_vmem, ref), "VMEM path mismatch vs reference"

    # Large-table path (tables stay in HBM, per-row DMA gather directly into
    # the output block) — forced here for coverage.
    out_hbm = jax.block_until_ready(
        token_id_to_embedding(input_ids, shared_table, soft_table,
                              force_hbm_path=True))
    assert out_hbm.shape == (B, S, H)
    assert jnp.array_equal(out_hbm, ref), "HBM path mismatch vs reference"

    print("KERNEL_OK")
</pallas_src>

<mosaic_0001>
module attributes {stable_mosaic.version = 11 : i64} {
  func.func @kernel(%arg0: i32, %arg1: memref<16xi32, #tpu.memory_space<smem>>, %arg2: memref<128x32xf32, #tpu.memory_space<vmem>>, %arg3: memref<8x32xf32, #tpu.memory_space<vmem>>, %arg4: memref<16x32xf32, #tpu.memory_space<vmem>>) attributes {dimension_semantics = [#tpu.dimension_semantics<parallel>], iteration_bounds = array<i64: 1>, scalar_prefetch = 1 : i64, scratch_operands = 0 : i64, tpu.core_type = #tpu.core_type<tc>, window_params = [{pipeline_mode = #tpu.pipeline_mode<synchronous>, transform_indices = @transform_0, window_bounds = array<i64: 128, 32>}, {pipeline_mode = #tpu.pipeline_mode<synchronous>, transform_indices = @transform_1, window_bounds = array<i64: 8, 32>}, {transform_indices = @transform_2, window_bounds = array<i64: 16, 32>}]} {
    %c16_i32 = arith.constant 16 : i32
    %0 = arith.muli %arg0, %c16_i32 : i32
    %c0_i32 = arith.constant 0 : i32
    %1 = arith.addi %0, %c0_i32 : i32
    %c16_i32_0 = arith.constant 16 : i32
    %2 = arith.cmpi slt, %1, %c16_i32_0 : i32
    %3 = arith.extui %2 : i1 to i32
    %c0_i32_1 = arith.constant 0 : i32
    %4 = arith.cmpi ne, %3, %c0_i32_1 : i32
    scf.if %4 {
      %65 = arith.index_cast %1 : i32 to index
      %66 = memref.load %arg1[%65] : memref<16xi32, #tpu.memory_space<smem>>
      %c128_i32 = arith.constant 128 : i32
      %67 = arith.cmpi slt, %66, %c128_i32 : i32
      %c0_i32_32 = arith.constant 0 : i32
      %68 = arith.select %67, %66, %c0_i32_32 : i32
      %c0_i32_33 = arith.constant 0 : i32
      %c127_i32 = arith.constant 127 : i32
      %69 = arith.maxsi %c0_i32_33, %68 : i32
      %70 = arith.minsi %c127_i32, %69 : i32
      %c128_i32_34 = arith.constant 128 : i32
      %71 = arith.subi %66, %c128_i32_34 : i32
      %c0_i32_35 = arith.constant 0 : i32
      %c7_i32_36 = arith.constant 7 : i32
      %72 = arith.maxsi %c0_i32_35, %71 : i32
      %73 = arith.minsi %c7_i32_36, %72 : i32
      %74 = arith.index_cast %70 : i32 to index
      %c0 = arith.constant 0 : index
      %75 = vector.load %arg2[%74, %c0] : memref<128x32xf32, #tpu.memory_space<vmem>>, vector<1x32xf32>
      %76 = arith.index_cast %73 : i32 to index
      %c0_37 = arith.constant 0 : index
      %77 = vector.load %arg3[%76, %c0_37] : memref<8x32xf32, #tpu.memory_space<vmem>>, vector<1x32xf32>
      %78 = arith.select %67, %75, %77 : vector<1x32xf32>
      %c0_38 = arith.constant 0 : index
      %c0_39 = arith.constant 0 : index
      %79 = vector.load %arg4[%c0_38, %c0_39] : memref<16x32xf32, #tpu.memory_space<vmem>>, vector<1x32xf32>
      tpu.vector_store %arg4[%c0_38, %c0_39], %78 {strides = array<i32>} : memref<16x32xf32, #tpu.memory_space<vmem>>, vector<1x32xf32>,
    } else {
    }
    %c1_i32 = arith.constant 1 : i32
    %5 = arith.addi %0, %c1_i32 : i32
    %c16_i32_2 = arith.constant 16 : i32
    %6 = arith.cmpi slt, %5, %c16_i32_2 : i32
    %7 = arith.extui %6 : i1 to i32
    %c0_i32_3 = arith.constant 0 : i32
    %8 = arith.cmpi ne, %7, %c0_i32_3 : i32
    scf.if %8 {
      %65 = arith.index_cast %5 : i32 to index
      %66 = memref.load %arg1[%65] : memref<16xi32, #tpu.memory_space<smem>>
      %c128_i32 = arith.constant 128 : i32
      %67 = arith.cmpi slt, %66, %c128_i32 : i32
      %c0_i32_32 = arith.constant 0 : i32
      %68 = arith.select %67, %66, %c0_i32_32 : i32
      %c0_i32_33 = arith.constant 0 : i32
      %c127_i32 = arith.constant 127 : i32
      %69 = arith.maxsi %c0_i32_33, %68 : i32
      %70 = arith.minsi %c127_i32, %69 : i32
      %c128_i32_34 = arith.constant 128 : i32
      %71 = arith.subi %66, %c128_i32_34 : i32
      %c0_i32_35 = arith.constant 0 : i32
      %c7_i32_36 = arith.constant 7 : i32
      %72 = arith.maxsi %c0_i32_35, %71 : i32
      %73 = arith.minsi %c7_i32_36, %72 : i32
      %74 = arith.index_cast %70 : i32 to index
      %c0 = arith.constant 0 : index
      %75 = vector.load %arg2[%74, %c0] : memref<128x32xf32, #tpu.memory_space<vmem>>, vector<1x32xf32>
      %76 = arith.index_cast %73 : i32 to index
      %c0_37 = arith.constant 0 : index
      %77 = vector.load %arg3[%76, %c0_37] : memref<8x32xf32, #tpu.memory_space<vmem>>, vector<1x32xf32>
      %78 = arith.select %67, %75, %77 : vector<1x32xf32>
      %c1 = arith.constant 1 : index
      %c0_38 = arith.constant 0 : index
      %79 = vector.load %arg4[%c1, %c0_38] : memref<16x32xf32, #tpu.memory_space<vmem>>, vector<1x32xf32>
      tpu.vector_store %arg4[%c1, %c0_38], %78 {strides = array<i32>} : memref<16x32xf32, #tpu.memory_space<vmem>>, vector<1x32xf32>,
    } else {
    }
    %c2_i32 = arith.constant 2 : i32
    %9 = arith.addi %0, %c2_i32 : i32
    %c16_i32_4 = arith.constant 16 : i32
    %10 = arith.cmpi slt, %9, %c16_i32_4 : i32
    %11 = arith.extui %10 : i1 to i32
    %c0_i32_5 = arith.constant 0 : i32
    %12 = arith.cmpi ne, %11, %c0_i32_5 : i32
    scf.if %12 {
      %65 = arith.index_cast %9 : i32 to index
      %66 = memref.load %arg1[%65] : memref<16xi32, #tpu.memory_space<smem>>
      %c128_i32 = arith.constant 128 : i32
      %67 = arith.cmpi slt, %66, %c128_i32 : i32
      %c0_i32_32 = arith.constant 0 : i32
      %68 = arith.select %67, %66, %c0_i32_32 : i32
      %c0_i32_33 = arith.constant 0 : i32
      %c127_i32 = arith.constant 127 : i32
      %69 = arith.maxsi %c0_i32_33, %68 : i32
      %70 = arith.minsi %c127_i32, %69 : i32
      %c128_i32_34 = arith.constant 128 : i32
      %71 = arith.subi %66, %c128_i32_34 : i32
      %c0_i32_35 = arith.constant 0 : i32
      %c7_i32_36 = arith.constant 7 : i32
      %72 = arith.maxsi %c0_i32_35, %71 : i32
      %73 = arith.minsi %c7_i32_36, %72 : i32
      %74 = arith.index_cast %70 : i32 to index
      %c0 = arith.constant 0 : index
      %75 = vector.load %arg2[%74, %c0] : memref<128x32xf32, #tpu.memory_space<vmem>>, vector<1x32xf32>
      %76 = arith.index_cast %73 : i32 to index
      %c0_37 = arith.constant 0 : index
      %77 = vector.load %arg3[%76, %c0_37] : memref<8x32xf32, #tpu.memory_space<vmem>>, vector<1x32xf32>
      %78 = arith.select %67, %75, %77 : vector<1x32xf32>
      %c2 = arith.constant 2 : index
      %c0_38 = arith.constant 0 : index
      %79 = vector.load %arg4[%c2, %c0_38] : memref<16x32xf32, #tpu.memory_space<vmem>>, vector<1x32xf32>
      tpu.vector_store %arg4[%c2, %c0_38], %78 {strides = array<i32>} : memref<16x32xf32, #tpu.memory_space<vmem>>, vector<1x32xf32>,
    } else {
    }
    %c3_i32 = arith.constant 3 : i32
    %13 = arith.addi %0, %c3_i32 : i32
    %c16_i32_6 = arith.constant 16 : i32
    %14 = arith.cmpi slt, %13, %c16_i32_6 : i32
    %15 = arith.extui %14 : i1 to i32
    %c0_i32_7 = arith.constant 0 : i32
    %16 = arith.cmpi ne, %15, %c0_i32_7 : i32
    scf.if %16 {
      %65 = arith.index_cast %13 : i32 to index
      %66 = memref.load %arg1[%65] : memref<16xi32, #tpu.memory_space<smem>>
      %c128_i32 = arith.constant 128 : i32
      %67 = arith.cmpi slt, %66, %c128_i32 : i32
      %c0_i32_32 = arith.constant 0 : i32
      %68 = arith.select %67, %66, %c0_i32_32 : i32
      %c0_i32_33 = arith.constant 0 : i32
      %c127_i32 = arith.constant 127 : i32
      %69 = arith.maxsi %c0_i32_33, %68 : i32
      %70 = arith.minsi %c127_i32, %69 : i32
      %c128_i32_34 = arith.constant 128 : i32
      %71 = arith.subi %66, %c128_i32_34 : i32
      %c0_i32_35 = arith.constant 0 : i32
      %c7_i32_36 = arith.constant 7 : i32
      %72 = arith.maxsi %c0_i32_35, %71 : i32
      %73 = arith.minsi %c7_i32_36, %72 : i32
      %74 = arith.index_cast %70 : i32 to index
      %c0 = arith.constant 0 : index
      %75 = vector.load %arg2[%74, %c0] : memref<128x32xf32, #tpu.memory_space<vmem>>, vector<1x32xf32>
      %76 = arith.index_cast %73 : i32 to index
      %c0_37 = arith.constant 0 : index
      %77 = vector.load %arg3[%76, %c0_37] : memref<8x32xf32, #tpu.memory_space<vmem>>, vector<1x32xf32>
      %78 = arith.select %67, %75, %77 : vector<1x32xf32>
      %c3 = arith.constant 3 : index
      %c0_38 = arith.constant 0 : index
      %79 = vector.load %arg4[%c3, %c0_38] : memref<16x32xf32, #tpu.memory_space<vmem>>, vector<1x32xf32>
      tpu.vector_store %arg4[%c3, %c0_38], %78 {strides = array<i32>} : memref<16x32xf32, #tpu.memory_space<vmem>>, vector<1x32xf32>,
    } else {
    }
    %c4_i32 = arith.constant 4 : i32
    %17 = arith.addi %0, %c4_i32 : i32
    %c16_i32_8 = arith.constant 16 : i32
    %18 = arith.cmpi slt, %17, %c16_i32_8 : i32
    %19 = arith.extui %18 : i1 to i32
    %c0_i32_9 = arith.constant 0 : i32
    %20 = arith.cmpi ne, %19, %c0_i32_9 : i32
    scf.if %20 {
      %65 = arith.index_cast %17 : i32 to index
      %66 = memref.load %arg1[%65] : memref<16xi32, #tpu.memory_space<smem>>
      %c128_i32 = arith.constant 128 : i32
      %67 = arith.cmpi slt, %66, %c128_i32 : i32
      %c0_i32_32 = arith.constant 0 : i32
      %68 = arith.select %67, %66, %c0_i32_32 : i32
      %c0_i32_33 = arith.constant 0 : i32
      %c127_i32 = arith.constant 127 : i32
      %69 = arith.maxsi %c0_i32_33, %68 : i32
      %70 = arith.minsi %c127_i32, %69 : i32
      %c128_i32_34 = arith.constant 128 : i32
      %71 = arith.subi %66, %c128_i32_34 : i32
      %c0_i32_35 = arith.constant 0 : i32
      %c7_i32_36 = arith.constant 7 : i32
      %72 = arith.maxsi %c0_i32_35, %71 : i32
      %73 = arith.minsi %c7_i32_36, %72 : i32
      %74 = arith.index_cast %70 : i32 to index
      %c0 = arith.constant 0 : index
      %75 = vector.load %arg2[%74, %c0] : memref<128x32xf32, #tpu.memory_space<vmem>>, vector<1x32xf32>
      %76 = arith.index_cast %73 : i32 to index
      %c0_37 = arith.constant 0 : index
      %77 = vector.load %arg3[%76, %c0_37] : memref<8x32xf32, #tpu.memory_space<vmem>>, vector<1x32xf32>
      %78 = arith.select %67, %75, %77 : vector<1x32xf32>
      %c4 = arith.constant 4 : index
      %c0_38 = arith.constant 0 : index
      %79 = vector.load %arg4[%c4, %c0_38] : memref<16x32xf32, #tpu.memory_space<vmem>>, vector<1x32xf32>
      tpu.vector_store %arg4[%c4, %c0_38], %78 {strides = array<i32>} : memref<16x32xf32, #tpu.memory_space<vmem>>, vector<1x32xf32>,
    } else {
    }
    %c5_i32 = arith.constant 5 : i32
    %21 = arith.addi %0, %c5_i32 : i32
    %c16_i32_10 = arith.constant 16 : i32
    %22 = arith.cmpi slt, %21, %c16_i32_10 : i32
    %23 = arith.extui %22 : i1 to i32
    %c0_i32_11 = arith.constant 0 : i32
    %24 = arith.cmpi ne, %23, %c0_i32_11 : i32
    scf.if %24 {
      %65 = arith.index_cast %21 : i32 to index
      %66 = memref.load %arg1[%65] : memref<16xi32, #tpu.memory_space<smem>>
      %c128_i32 = arith.constant 128 : i32
      %67 = arith.cmpi slt, %66, %c128_i32 : i32
      %c0_i32_32 = arith.constant 0 : i32
      %68 = arith.select %67, %66, %c0_i32_32 : i32
      %c0_i32_33 = arith.constant 0 : i32
      %c127_i32 = arith.constant 127 : i32
      %69 = arith.maxsi %c0_i32_33, %68 : i32
      %70 = arith.minsi %c127_i32, %69 : i32
      %c128_i32_34 = arith.constant 128 : i32
      %71 = arith.subi %66, %c128_i32_34 : i32
      %c0_i32_35 = arith.constant 0 : i32
      %c7_i32_36 = arith.constant 7 : i32
      %72 = arith.maxsi %c0_i32_35, %71 : i32
      %73 = arith.minsi %c7_i32_36, %72 : i32
      %74 = arith.index_cast %70 : i32 to index
      %c0 = arith.constant 0 : index
      %75 = vector.load %arg2[%74, %c0] : memref<128x32xf32, #tpu.memory_space<vmem>>, vector<1x32xf32>
      %76 = arith.index_cast %73 : i32 to index
      %c0_37 = arith.constant 0 : index
      %77 = vector.load %arg3[%76, %c0_37] : memref<8x32xf32, #tpu.memory_space<vmem>>, vector<1x32xf32>
      %78 = arith.select %67, %75, %77 : vector<1x32xf32>
      %c5 = arith.constant 5 : index
      %c0_38 = arith.constant 0 : index
      %79 = vector.load %arg4[%c5, %c0_38] : memref<16x32xf32, #tpu.memory_space<vmem>>, vector<1x32xf32>
      tpu.vector_store %arg4[%c5, %c0_38], %78 {strides = array<i32>} : memref<16x32xf32, #tpu.memory_space<vmem>>, vector<1x32xf32>,
    } else {
    }
    %c6_i32 = arith.constant 6 : i32
    %25 = arith.addi %0, %c6_i32 : i32
    %c16_i32_12 = arith.constant 16 : i32
    %26 = arith.cmpi slt, %25, %c16_i32_12 : i32
    %27 = arith.extui %26 : i1 to i32
    %c0_i32_13 = arith.constant 0 : i32
    %28 = arith.cmpi ne, %27, %c0_i32_13 : i32
    scf.if %28 {
      %65 = arith.index_cast %25 : i32 to index
      %66 = memref.load %arg1[%65] : memref<16xi32, #tpu.memory_space<smem>>
      %c128_i32 = arith.constant 128 : i32
      %67 = arith.cmpi slt, %66, %c128_i32 : i32
      %c0_i32_32 = arith.constant 0 : i32
      %68 = arith.select %67, %66, %c0_i32_32 : i32
      %c0_i32_33 = arith.constant 0 : i32
      %c127_i32 = arith.constant 127 : i32
      %69 = arith.maxsi %c0_i32_33, %68 : i32
      %70 = arith.minsi %c127_i32, %69 : i32
      %c128_i32_34 = arith.constant 128 : i32
      %71 = arith.subi %66, %c128_i32_34 : i32
      %c0_i32_35 = arith.constant 0 : i32
      %c7_i32_36 = arith.constant 7 : i32
      %72 = arith.maxsi %c0_i32_35, %71 : i32
      %73 = arith.minsi %c7_i32_36, %72 : i32
      %74 = arith.index_cast %70 : i32 to index
      %c0 = arith.constant 0 : index
      %75 = vector.load %arg2[%74, %c0] : memref<128x32xf32, #tpu.memory_space<vmem>>, vector<1x32xf32>
      %76 = arith.index_cast %73 : i32 to index
      %c0_37 = arith.constant 0 : index
      %77 = vector.load %arg3[%76, %c0_37] : memref<8x32xf32, #tpu.memory_space<vmem>>, vector<1x32xf32>
      %78 = arith.select %67, %75, %77 : vector<1x32xf32>
      %c6 = arith.constant 6 : index
      %c0_38 = arith.constant 0 : index
      %79 = vector.load %arg4[%c6, %c0_38] : memref<16x32xf32, #tpu.memory_space<vmem>>, vector<1x32xf32>
      tpu.vector_store %arg4[%c6, %c0_38], %78 {strides = array<i32>} : memref<16x32xf32, #tpu.memory_space<vmem>>, vector<1x32xf32>,
    } else {
    }
    %c7_i32 = arith.constant 7 : i32
    %29 = arith.addi %0, %c7_i32 : i32
    %c16_i32_14 = arith.constant 16 : i32
    %30 = arith.cmpi slt, %29, %c16_i32_14 : i32
    %31 = arith.extui %30 : i1 to i32
    %c0_i32_15 = arith.constant 0 : i32
    %32 = arith.cmpi ne, %31, %c0_i32_15 : i32
    scf.if %32 {
      %65 = arith.index_cast %29 : i32 to index
      %66 = memref.load %arg1[%65] : memref<16xi32, #tpu.memory_space<smem>>
      %c128_i32 = arith.constant 128 : i32
      %67 = arith.cmpi slt, %66, %c128_i32 : i32
      %c0_i32_32 = arith.constant 0 : i32
      %68 = arith.select %67, %66, %c0_i32_32 : i32
      %c0_i32_33 = arith.constant 0 : i32
      %c127_i32 = arith.constant 127 : i32
      %69 = arith.maxsi %c0_i32_33, %68 : i32
      %70 = arith.minsi %c127_i32, %69 : i32
      %c128_i32_34 = arith.constant 128 : i32
      %71 = arith.subi %66, %c128_i32_34 : i32
      %c0_i32_35 = arith.constant 0 : i32
      %c7_i32_36 = arith.constant 7 : i32
      %72 = arith.maxsi %c0_i32_35, %71 : i32
      %73 = arith.minsi %c7_i32_36, %72 : i32
      %74 = arith.index_cast %70 : i32 to index
      %c0 = arith.constant 0 : index
      %75 = vector.load %arg2[%74, %c0] : memref<128x32xf32, #tpu.memory_space<vmem>>, vector<1x32xf32>
      %76 = arith.index_cast %73 : i32 to index
      %c0_37 = arith.constant 0 : index
      %77 = vector.load %arg3[%76, %c0_37] : memref<8x32xf32, #tpu.memory_space<vmem>>, vector<1x32xf32>
      %78 = arith.select %67, %75, %77 : vector<1x32xf32>
      %c7 = arith.constant 7 : index
      %c0_38 = arith.constant 0 : index
      %79 = vector.load %arg4[%c7, %c0_38] : memref<16x32xf32, #tpu.memory_space<vmem>>, vector<1x32xf32>
      tpu.vector_store %arg4[%c7, %c0_38], %78 {strides = array<i32>} : memref<16x32xf32, #tpu.memory_space<vmem>>, vector<1x32xf32>,
    } else {
    }
    %c8_i32 = arith.constant 8 : i32
    %33 = arith.addi %0, %c8_i32 : i32
    %c16_i32_16 = arith.constant 16 : i32
    %34 = arith.cmpi slt, %33, %c16_i32_16 : i32
    %35 = arith.extui %34 : i1 to i32
    %c0_i32_17 = arith.constant 0 : i32
    %36 = arith.cmpi ne, %35, %c0_i32_17 : i32
    scf.if %36 {
      %65 = arith.index_cast %33 : i32 to index
      %66 = memref.load %arg1[%65] : memref<16xi32, #tpu.memory_space<smem>>
      %c128_i32 = arith.constant 128 : i32
      %67 = arith.cmpi slt, %66, %c128_i32 : i32
      %c0_i32_32 = arith.constant 0 : i32
      %68 = arith.select %67, %66, %c0_i32_32 : i32
      %c0_i32_33 = arith.constant 0 : i32
      %c127_i32 = arith.constant 127 : i32
      %69 = arith.maxsi %c0_i32_33, %68 : i32
      %70 = arith.minsi %c127_i32, %69 : i32
      %c128_i32_34 = arith.constant 128 : i32
      %71 = arith.subi %66, %c128_i32_34 : i32
      %c0_i32_35 = arith.constant 0 : i32
      %c7_i32_36 = arith.constant 7 : i32
      %72 = arith.maxsi %c0_i32_35, %71 : i32
      %73 = arith.minsi %c7_i32_36, %72 : i32
      %74 = arith.index_cast %70 : i32 to index
      %c0 = arith.constant 0 : index
      %75 = vector.load %arg2[%74, %c0] : memref<128x32xf32, #tpu.memory_space<vmem>>, vector<1x32xf32>
      %76 = arith.index_cast %73 : i32 to index
      %c0_37 = arith.constant 0 : index
      %77 = vector.load %arg3[%76, %c0_37] : memref<8x32xf32, #tpu.memory_space<vmem>>, vector<1x32xf32>
      %78 = arith.select %67, %75, %77 : vector<1x32xf32>
      %c8 = arith.constant 8 : index
      %c0_38 = arith.constant 0 : index
      %79 = vector.load %arg4[%c8, %c0_38] : memref<16x32xf32, #tpu.memory_space<vmem>>, vector<1x32xf32>
      tpu.vector_store %arg4[%c8, %c0_38], %78 {strides = array<i32>} : memref<16x32xf32, #tpu.memory_space<vmem>>, vector<1x32xf32>,
    } else {
    }
    %c9_i32 = arith.constant 9 : i32
    %37 = arith.addi %0, %c9_i32 : i32
    %c16_i32_18 = arith.constant 16 : i32
    %38 = arith.cmpi slt, %37, %c16_i32_18 : i32
    %39 = arith.extui %38 : i1 to i32
    %c0_i32_19 = arith.constant 0 : i32
    %40 = arith.cmpi ne, %39, %c0_i32_19 : i32
    scf.if %40 {
      %65 = arith.index_cast %37 : i32 to index
      %66 = memref.load %arg1[%65] : memref<16xi32, #tpu.memory_space<smem>>
      %c128_i32 = arith.constant 128 : i32
      %67 = arith.cmpi slt, %66, %c128_i32 : i32
      %c0_i32_32 = arith.constant 0 : i32
      %68 = arith.select %67, %66, %c0_i32_32 : i32
      %c0_i32_33 = arith.constant 0 : i32
      %c127_i32 = arith.constant 127 : i32
      %69 = arith.maxsi %c0_i32_33, %68 : i32
      %70 = arith.minsi %c127_i32, %69 : i32
      %c128_i32_34 = arith.constant 128 : i32
      %71 = arith.subi %66, %c128_i32_34 : i32
      %c0_i32_35 = arith.constant 0 : i32
      %c7_i32_36 = arith.constant 7 : i32
      %72 = arith.maxsi %c0_i32_35, %71 : i32
      %73 = arith.minsi %c7_i32_36, %72 : i32
      %74 = arith.index_cast %70 : i32 to index
      %c0 = arith.constant 0 : index
      %75 = vector.load %arg2[%74, %c0] : memref<128x32xf32, #tpu.memory_space<vmem>>, vector<1x32xf32>
      %76 = arith.index_cast %73 : i32 to index
      %c0_37 = arith.constant 0 : index
      %77 = vector.load %arg3[%76, %c0_37] : memref<8x32xf32, #tpu.memory_space<vmem>>, vector<1x32xf32>
      %78 = arith.select %67, %75, %77 : vector<1x32xf32>
      %c9 = arith.constant 9 : index
      %c0_38 = arith.constant 0 : index
      %79 = vector.load %arg4[%c9, %c0_38] : memref<16x32xf32, #tpu.memory_space<vmem>>, vector<1x32xf32>
      tpu.vector_store %arg4[%c9, %c0_38], %78 {strides = array<i32>} : memref<16x32xf32, #tpu.memory_space<vmem>>, vector<1x32xf32>,
    } else {
    }
    %c10_i32 = arith.constant 10 : i32
    %41 = arith.addi %0, %c10_i32 : i32
    %c16_i32_20 = arith.constant 16 : i32
    %42 = arith.cmpi slt, %41, %c16_i32_20 : i32
    %43 = arith.extui %42 : i1 to i32
    %c0_i32_21 = arith.constant 0 : i32
    %44 = arith.cmpi ne, %43, %c0_i32_21 : i32
    scf.if %44 {
      %65 = arith.index_cast %41 : i32 to index
      %66 = memref.load %arg1[%65] : memref<16xi32, #tpu.memory_space<smem>>
      %c128_i32 = arith.constant 128 : i32
      %67 = arith.cmpi slt, %66, %c128_i32 : i32
      %c0_i32_32 = arith.constant 0 : i32
      %68 = arith.select %67, %66, %c0_i32_32 : i32
      %c0_i32_33 = arith.constant 0 : i32
      %c127_i32 = arith.constant 127 : i32
      %69 = arith.maxsi %c0_i32_33, %68 : i32
      %70 = arith.minsi %c127_i32, %69 : i32
      %c128_i32_34 = arith.constant 128 : i32
      %71 = arith.subi %66, %c128_i32_34 : i32
      %c0_i32_35 = arith.constant 0 : i32
      %c7_i32_36 = arith.constant 7 : i32
      %72 = arith.maxsi %c0_i32_35, %71 : i32
      %73 = arith.minsi %c7_i32_36, %72 : i32
      %74 = arith.index_cast %70 : i32 to index
      %c0 = arith.constant 0 : index
      %75 = vector.load %arg2[%74, %c0] : memref<128x32xf32, #tpu.memory_space<vmem>>, vector<1x32xf32>
      %76 = arith.index_cast %73 : i32 to index
      %c0_37 = arith.constant 0 : index
      %77 = vector.load %arg3[%76, %c0_37] : memref<8x32xf32, #tpu.memory_space<vmem>>, vector<1x32xf32>
      %78 = arith.select %67, %75, %77 : vector<1x32xf32>
      %c10 = arith.constant 10 : index
      %c0_38 = arith.constant 0 : index
      %79 = vector.load %arg4[%c10, %c0_38] : memref<16x32xf32, #tpu.memory_space<vmem>>, vector<1x32xf32>
      tpu.vector_store %arg4[%c10, %c0_38], %78 {strides = array<i32>} : memref<16x32xf32, #tpu.memory_space<vmem>>, vector<1x32xf32>,
    } else {
    }
    %c11_i32 = arith.constant 11 : i32
    %45 = arith.addi %0, %c11_i32 : i32
    %c16_i32_22 = arith.constant 16 : i32
    %46 = arith.cmpi slt, %45, %c16_i32_22 : i32
    %47 = arith.extui %46 : i1 to i32
    %c0_i32_23 = arith.constant 0 : i32
    %48 = arith.cmpi ne, %47, %c0_i32_23 : i32
    scf.if %48 {
      %65 = arith.index_cast %45 : i32 to index
      %66 = memref.load %arg1[%65] : memref<16xi32, #tpu.memory_space<smem>>
      %c128_i32 = arith.constant 128 : i32
      %67 = arith.cmpi slt, %66, %c128_i32 : i32
      %c0_i32_32 = arith.constant 0 : i32
      %68 = arith.select %67, %66, %c0_i32_32 : i32
      %c0_i32_33 = arith.constant 0 : i32
      %c127_i32 = arith.constant 127 : i32
      %69 = arith.maxsi %c0_i32_33, %68 : i32
      %70 = arith.minsi %c127_i32, %69 : i32
      %c128_i32_34 = arith.constant 128 : i32
      %71 = arith.subi %66, %c128_i32_34 : i32
      %c0_i32_35 = arith.constant 0 : i32
      %c7_i32_36 = arith.constant 7 : i32
      %72 = arith.maxsi %c0_i32_35, %71 : i32
      %73 = arith.minsi %c7_i32_36, %72 : i32
      %74 = arith.index_cast %70 : i32 to index
      %c0 = arith.constant 0 : index
      %75 = vector.load %arg2[%74, %c0] : memref<128x32xf32, #tpu.memory_space<vmem>>, vector<1x32xf32>
      %76 = arith.index_cast %73 : i32 to index
      %c0_37 = arith.constant 0 : index
      %77 = vector.load %arg3[%76, %c0_37] : memref<8x32xf32, #tpu.memory_space<vmem>>, vector<1x32xf32>
      %78 = arith.select %67, %75, %77 : vector<1x32xf32>
      %c11 = arith.constant 11 : index
      %c0_38 = arith.constant 0 : index
      %79 = vector.load %arg4[%c11, %c0_38] : memref<16x32xf32, #tpu.memory_space<vmem>>, vector<1x32xf32>
      tpu.vector_store %arg4[%c11, %c0_38], %78 {strides = array<i32>} : memref<16x32xf32, #tpu.memory_space<vmem>>, vector<1x32xf32>,
    } else {
    }
    %c12_i32 = arith.constant 12 : i32
    %49 = arith.addi %0, %c12_i32 : i32
    %c16_i32_24 = arith.constant 16 : i32
    %50 = arith.cmpi slt, %49, %c16_i32_24 : i32
    %51 = arith.extui %50 : i1 to i32
    %c0_i32_25 = arith.constant 0 : i32
    %52 = arith.cmpi ne, %51, %c0_i32_25 : i32
    scf.if %52 {
      %65 = arith.index_cast %49 : i32 to index
      %66 = memref.load %arg1[%65] : memref<16xi32, #tpu.memory_space<smem>>
      %c128_i32 = arith.constant 128 : i32
      %67 = arith.cmpi slt, %66, %c128_i32 : i32
      %c0_i32_32 = arith.constant 0 : i32
      %68 = arith.select %67, %66, %c0_i32_32 : i32
      %c0_i32_33 = arith.constant 0 : i32
      %c127_i32 = arith.constant 127 : i32
      %69 = arith.maxsi %c0_i32_33, %68 : i32
      %70 = arith.minsi %c127_i32, %69 : i32
      %c128_i32_34 = arith.constant 128 : i32
      %71 = arith.subi %66, %c128_i32_34 : i32
      %c0_i32_35 = arith.constant 0 : i32
      %c7_i32_36 = arith.constant 7 : i32
      %72 = arith.maxsi %c0_i32_35, %71 : i32
      %73 = arith.minsi %c7_i32_36, %72 : i32
      %74 = arith.index_cast %70 : i32 to index
      %c0 = arith.constant 0 : index
      %75 = vector.load %arg2[%74, %c0] : memref<128x32xf32, #tpu.memory_space<vmem>>, vector<1x32xf32>
      %76 = arith.index_cast %73 : i32 to index
      %c0_37 = arith.constant 0 : index
      %77 = vector.load %arg3[%76, %c0_37] : memref<8x32xf32, #tpu.memory_space<vmem>>, vector<1x32xf32>
      %78 = arith.select %67, %75, %77 : vector<1x32xf32>
      %c12 = arith.constant 12 : index
      %c0_38 = arith.constant 0 : index
      %79 = vector.load %arg4[%c12, %c0_38] : memref<16x32xf32, #tpu.memory_space<vmem>>, vector<1x32xf32>
      tpu.vector_store %arg4[%c12, %c0_38], %78 {strides = array<i32>} : memref<16x32xf32, #tpu.memory_space<vmem>>, vector<1x32xf32>,
    } else {
    }
    %c13_i32 = arith.constant 13 : i32
    %53 = arith.addi %0, %c13_i32 : i32
    %c16_i32_26 = arith.constant 16 : i32
    %54 = arith.cmpi slt, %53, %c16_i32_26 : i32
    %55 = arith.extui %54 : i1 to i32
    %c0_i32_27 = arith.constant 0 : i32
    %56 = arith.cmpi ne, %55, %c0_i32_27 : i32
    scf.if %56 {
      %65 = arith.index_cast %53 : i32 to index
      %66 = memref.load %arg1[%65] : memref<16xi32, #tpu.memory_space<smem>>
      %c128_i32 = arith.constant 128 : i32
      %67 = arith.cmpi slt, %66, %c128_i32 : i32
      %c0_i32_32 = arith.constant 0 : i32
      %68 = arith.select %67, %66, %c0_i32_32 : i32
      %c0_i32_33 = arith.constant 0 : i32
      %c127_i32 = arith.constant 127 : i32
      %69 = arith.maxsi %c0_i32_33, %68 : i32
      %70 = arith.minsi %c127_i32, %69 : i32
      %c128_i32_34 = arith.constant 128 : i32
      %71 = arith.subi %66, %c128_i32_34 : i32
      %c0_i32_35 = arith.constant 0 : i32
      %c7_i32_36 = arith.constant 7 : i32
      %72 = arith.maxsi %c0_i32_35, %71 : i32
      %73 = arith.minsi %c7_i32_36, %72 : i32
      %74 = arith.index_cast %70 : i32 to index
      %c0 = arith.constant 0 : index
      %75 = vector.load %arg2[%74, %c0] : memref<128x32xf32, #tpu.memory_space<vmem>>, vector<1x32xf32>
      %76 = arith.index_cast %73 : i32 to index
      %c0_37 = arith.constant 0 : index
      %77 = vector.load %arg3[%76, %c0_37] : memref<8x32xf32, #tpu.memory_space<vmem>>, vector<1x32xf32>
      %78 = arith.select %67, %75, %77 : vector<1x32xf32>
      %c13 = arith.constant 13 : index
      %c0_38 = arith.constant 0 : index
      %79 = vector.load %arg4[%c13, %c0_38] : memref<16x32xf32, #tpu.memory_space<vmem>>, vector<1x32xf32>
      tpu.vector_store %arg4[%c13, %c0_38], %78 {strides = array<i32>} : memref<16x32xf32, #tpu.memory_space<vmem>>, vector<1x32xf32>,
    } else {
    }
    %c14_i32 = arith.constant 14 : i32
    %57 = arith.addi %0, %c14_i32 : i32
    %c16_i32_28 = arith.constant 16 : i32
    %58 = arith.cmpi slt, %57, %c16_i32_28 : i32
    %59 = arith.extui %58 : i1 to i32
    %c0_i32_29 = arith.constant 0 : i32
    %60 = arith.cmpi ne, %59, %c0_i32_29 : i32
    scf.if %60 {
      %65 = arith.index_cast %57 : i32 to index
      %66 = memref.load %arg1[%65] : memref<16xi32, #tpu.memory_space<smem>>
      %c128_i32 = arith.constant 128 : i32
      %67 = arith.cmpi slt, %66, %c128_i32 : i32
      %c0_i32_32 = arith.constant 0 : i32
      %68 = arith.select %67, %66, %c0_i32_32 : i32
      %c0_i32_33 = arith.constant 0 : i32
      %c127_i32 = arith.constant 127 : i32
      %69 = arith.maxsi %c0_i32_33, %68 : i32
      %70 = arith.minsi %c127_i32, %69 : i32
      %c128_i32_34 = arith.constant 128 : i32
      %71 = arith.subi %66, %c128_i32_34 : i32
      %c0_i32_35 = arith.constant 0 : i32
      %c7_i32_36 = arith.constant 7 : i32
      %72 = arith.maxsi %c0_i32_35, %71 : i32
      %73 = arith.minsi %c7_i32_36, %72 : i32
      %74 = arith.index_cast %70 : i32 to index
      %c0 = arith.constant 0 : index
      %75 = vector.load %arg2[%74, %c0] : memref<128x32xf32, #tpu.memory_space<vmem>>, vector<1x32xf32>
      %76 = arith.index_cast %73 : i32 to index
      %c0_37 = arith.constant 0 : index
      %77 = vector.load %arg3[%76, %c0_37] : memref<8x32xf32, #tpu.memory_space<vmem>>, vector<1x32xf32>
      %78 = arith.select %67, %75, %77 : vector<1x32xf32>
      %c14 = arith.constant 14 : index
      %c0_38 = arith.constant 0 : index
      %79 = vector.load %arg4[%c14, %c0_38] : memref<16x32xf32, #tpu.memory_space<vmem>>, vector<1x32xf32>
      tpu.vector_store %arg4[%c14, %c0_38], %78 {strides = array<i32>} : memref<16x32xf32, #tpu.memory_space<vmem>>, vector<1x32xf32>,
    } else {
    }
    %c15_i32 = arith.constant 15 : i32
    %61 = arith.addi %0, %c15_i32 : i32
    %c16_i32_30 = arith.constant 16 : i32
    %62 = arith.cmpi slt, %61, %c16_i32_30 : i32
    %63 = arith.extui %62 : i1 to i32
    %c0_i32_31 = arith.constant 0 : i32
    %64 = arith.cmpi ne, %63, %c0_i32_31 : i32
    scf.if %64 {
      %65 = arith.index_cast %61 : i32 to index
      %66 = memref.load %arg1[%65] : memref<16xi32, #tpu.memory_space<smem>>
      %c128_i32 = arith.constant 128 : i32
      %67 = arith.cmpi slt, %66, %c128_i32 : i32
      %c0_i32_32 = arith.constant 0 : i32
      %68 = arith.select %67, %66, %c0_i32_32 : i32
      %c0_i32_33 = arith.constant 0 : i32
      %c127_i32 = arith.constant 127 : i32
      %69 = arith.maxsi %c0_i32_33, %68 : i32
      %70 = arith.minsi %c127_i32, %69 : i32
      %c128_i32_34 = arith.constant 128 : i32
      %71 = arith.subi %66, %c128_i32_34 : i32
      %c0_i32_35 = arith.constant 0 : i32
      %c7_i32_36 = arith.constant 7 : i32
      %72 = arith.maxsi %c0_i32_35, %71 : i32
      %73 = arith.minsi %c7_i32_36, %72 : i32
      %74 = arith.index_cast %70 : i32 to index
      %c0 = arith.constant 0 : index
      %75 = vector.load %arg2[%74, %c0] : memref<128x32xf32, #tpu.memory_space<vmem>>, vector<1x32xf32>
      %76 = arith.index_cast %73 : i32 to index
      %c0_37 = arith.constant 0 : index
      %77 = vector.load %arg3[%76, %c0_37] : memref<8x32xf32, #tpu.memory_space<vmem>>, vector<1x32xf32>
      %78 = arith.select %67, %75, %77 : vector<1x32xf32>
      %c15 = arith.constant 15 : index
      %c0_38 = arith.constant 0 : index
      %79 = vector.load %arg4[%c15, %c0_38] : memref<16x32xf32, #tpu.memory_space<vmem>>, vector<1x32xf32>
      tpu.vector_store %arg4[%c15, %c0_38], %78 {strides = array<i32>} : memref<16x32xf32, #tpu.memory_space<vmem>>, vector<1x32xf32>,
    } else {
    }
    return
  }
  func.func @transform_0(%arg0: i32, %arg1: memref<16xi32, #tpu.memory_space<smem>>) -> (i32, i32) {
    %c0_i32 = arith.constant 0 : i32
    %c0_i32_0 = arith.constant 0 : i32
    %c0_i32_1 = arith.constant 0 : i32
    return %c0_i32, %c0_i32_0 : i32, i32
  }
  func.func @transform_1(%arg0: i32, %arg1: memref<16xi32, #tpu.memory_space<smem>>) -> (i32, i32) {
    %c0_i32 = arith.constant 0 : i32
    %c0_i32_0 = arith.constant 0 : i32
    %c0_i32_1 = arith.constant 0 : i32
    return %c0_i32, %c0_i32_0 : i32, i32
  }
  func.func @transform_2(%arg0: i32, %arg1: memref<16xi32, #tpu.memory_space<smem>>) -> (i32, i32) {
    %c0_i32 = arith.constant 0 : i32
    %c0_i32_0 = arith.constant 0 : i32
    return %arg0, %c0_i32 : i32, i32
  }
}

</mosaic_0001>

<bundles_post_ra>
// kernel: tpu_custom_call.1
= control target key start
LH: loop header
LB: loop body
LE: loop exit
PB: predicated region body
PF: predicated region fallthrough
CT: control target
= control target key end

     0   :  { %s1075_s0 = inlined_call_operand.vmem [shape: s32[16], index: 0, kind: input, shape index: {}]   ;;  %s1076_s1 = inlined_call_operand.vmem [shape: f32[128,32], index: 1, kind: input, shape index: {}]   ;;  %s1077_s2 = inlined_call_operand.vmem [shape: f32[8,32], index: 2, kind: input, shape index: {}]   ;;  %s1078_s3 = inlined_call_operand.hbm [shape: f32[16,32], index: 3, kind: output, shape index: {}]  }
   0x1   :  { %s8_s14 = sshll.u32 %s1075_s0, 4  ;;  %s9_s14 = int_to_ptr.vmem [resolvable:$true] %s8_s14 }
   0x2   :  { %s758_s15 = scalar_lea.vmem %s9_s14, 16  ;;  %p763_p1 = scmp.lt.s32.totalorder %s9_s14, %s9_s14 }
   0x3   :  { %p759_p0 = scmp.ne.s32.totalorder %s9_s14, %s758_s15  ;;  %p764_p2 = scmp.lt.s32.totalorder %s758_s15, %s758_s15 }
   0x5   :  { %p765_p3 = por %p764_p2, %p763_p1 }
   0x7   :  { %p766_p4 = pnand %p765_p3, %p759_p0 }
   0x9   :  { %769 = shalt.err (!%p766_p4)  }
   0xa   :  { %s796_s16 = smov [#allocation3]  }
   0xb   :  { %11 = dma.vmem_to_smem %s9_s14, 16, %s796_s16, [#allocation2] }
   0xc   :  { %792 = dma.done.wait [#allocation2], 16 }
   0xd   :  { %793 = vsyncadd [#allocation2], 4294967280 }
   0xe   :  { %13 = sfence }
   0xf   :  { %s24_s17 = sld [smem:[#allocation3]]  ;;  %s823_s18 = sld [smem:[#allocation3 + $0x1]] }
  0x10   :  { %s825_s19 = sld [smem:[#allocation3 + $0x2]]  ;;  %s827_s20 = sld [smem:[#allocation3 + $0x3]] }
  0x11   :  { %14 = vsyncpa [#allocation5], 0  ;;  %s829_s0 = sld [smem:[#allocation3 + $0x4]]  ;;  %s831_s21 = sld [smem:[#allocation3 + $0x5]]  ;;  %vm44_vm0 = vcmask 253952  }
  0x12   :  { %s833_s22 = sld [smem:[#allocation3 + $0x6]]  ;;  %s835_s23 = sld [smem:[#allocation3 + $0x7]] }
  0x13   :  { %s837_s24 = sld [smem:[#allocation3 + $0x8]]  ;;  %s839_s25 = sld [smem:[#allocation3 + $0x9]] }
  0x14   :  { %s841_s26 = sld [smem:[#allocation3 + $0xa]]  ;;  %s843_s27 = sld [smem:[#allocation3 + $0xb]] }
  0x15   :  { %p25_p5 = scmp.lt.s32.totalorder %s24_s17, 128  ;;  %s504_s28 = sadd.s32 4294967168, %s24_s17 }
  0x16   :  { %p32_p6 = scmp.gt.s32.totalorder %s504_s28, 0  ;;  %p505_p7 = scmp.lt.s32.totalorder %s504_s28, 7 }
  0x17   :  { %s1080_s17 = smov (!%p25_p5, %s24_s17), 0  ;;  %p52_p10 = scmp.lt.s32.totalorder %s823_s18, 128 }
  0x18   :  { %s1082_s28 = smov (!%p32_p6, %s504_s28), 0  ;;  %p27_p8 = scmp.gt.s32.totalorder %s1080_s17, 0 }
  0x19   :  { %p499_p9 = scmp.lt.s32.totalorder %s1080_s17, 127  ;;  %s1084_s28 = smov (!%p505_p7, %s1082_s28), 7 }
  0x1a   :  { %s1086_s17 = smov (!%p27_p8, %s1080_s17), 0  ;;  %s38_s4 = scalar_lea.vmem %s1077_s2, %s1084_s28 }
  0x1b   :  { %s1088_s17 = smov (!%p499_p9, %s1086_s17), 127  ;;  %v39_v0 = vld [vmem:[%s38_s4] sm:$0x1]  ;;  %s516_s9 = sadd.s32 4294967168, %s823_s18 }
  0x1c   :  { %s40_s5 = scalar_select %p25_p5, 1, 0 }
  0x1d   :  { %s36_s8 = scalar_lea.vmem %s1076_s1, %s1088_s17  ;;  %p59_p11 = scmp.gt.s32.totalorder %s516_s9, 0 }
  0x1e   :  { %v37_v1 = vld [vmem:[%s36_s8] sm:$0x1]  ;;  %v41_v2 = vstv %s40_s5  ;;  %s53_s10 = scalar_select %p52_p10, %s823_s18, 0 }
  0x1f   :  { %vm42_vm1 = vcmp.eq.s32.totalorder %v41_v2, 1  ;;  %p517_p12 = scmp.lt.s32.totalorder %s516_s9, 7  ;;  %s1090_s9 = smov (!%p59_p11, %s516_s9), 0 }
  0x20   :  { %v43_v3 = vsel %vm42_vm1, %v37_v1, %v39_v0  ;;  %p54_p13 = scmp.gt.s32.totalorder %s53_s10, 0  ;;  %p511_p0 = scmp.lt.s32.totalorder %s53_s10, 127 }
  0x21   :  { %45 = vst.msk [vmem:[#allocation4] sm:$0x1] %vm44_vm0, %v43_v3  ;;  %s1094_s9 = smov (!%p517_p12, %s1090_s9), 7  ;;  %p79_p1 = scmp.lt.s32.totalorder %s825_s19, 128 }
  0x22   :  { %s1092_s10 = smov (!%p54_p13, %s53_s10), 0  ;;  %s65_s13 = scalar_lea.vmem %s1077_s2, %s1094_s9 }
  0x23   :  { %s1096_s10 = smov (!%p511_p0, %s1092_s10), 127  ;;  %s528_s17 = sadd.s32 4294967168, %s825_s19  ;;  %v66_v5 = vld [vmem:[%s65_s13] sm:$0x1] }
  0x24   :  { %s63_s16 = scalar_lea.vmem %s1076_s1, %s1096_s10  ;;  %p86_p2 = scmp.gt.s32.totalorder %s528_s17, 0 }
  0x25   :  { %s67_s28 = scalar_select %p52_p10, 1, 0  ;;  %v64_v4 = vld [vmem:[%s63_s16] sm:$0x1] }
  0x26   :  { %s80_s29 = scalar_select %p79_p1, %s825_s19, 0 }
  0x27   :  { %v68_v6 = vstv %s67_s28  ;;  %p529_p3 = scmp.lt.s32.totalorder %s528_s17, 7  ;;  %s1098_s17 = smov (!%p86_p2, %s528_s17), 0 }
  0x28   :  { %vm69_vm2 = vcmp.eq.s32.totalorder %v68_v6, 1  ;;  %p81_p4 = scmp.gt.s32.totalorder %s80_s29, 0  ;;  %p523_p5 = scmp.lt.s32.totalorder %s80_s29, 127 }
  0x29   :  { %v70_v7 = vsel %vm69_vm2, %v64_v4, %v66_v5  ;;  %s1102_s17 = smov (!%p529_p3, %s1098_s17), 7  ;;  %p106_p6 = scmp.lt.s32.totalorder %s827_s20, 128 }
  0x2a   :  { %72 = vst.msk [vmem:[#allocation4 + $0x1] sm:$0x1] %vm44_vm0, %v70_v7  ;;  %s1100_s29 = smov (!%p81_p4, %s80_s29), 0  ;;  %s92_s4 = scalar_lea.vmem %s1077_s2, %s1102_s17 }
  0x2b   :  { %s1104_s29 = smov (!%p523_p5, %s1100_s29), 127  ;;  %s540_s8 = sadd.s32 4294967168, %s827_s20  ;;  %v93_v9 = vld [vmem:[%s92_s4] sm:$0x1] }
  0x2c   :  { %s90_s7 = scalar_lea.vmem %s1076_s1, %s1104_s29  ;;  %p113_p7 = scmp.gt.s32.totalorder %s540_s8, 0 }
  0x2d   :  { %s94_s9 = scalar_select %p79_p1, 1, 0  ;;  %v91_v8 = vld [vmem:[%s90_s7] sm:$0x1] }
  0x2e   :  { %s107_s10 = scalar_select %p106_p6, %s827_s20, 0 }
  0x2f   :  { %v95_v10 = vstv %s94_s9  ;;  %p541_p8 = scmp.lt.s32.totalorder %s540_s8, 7  ;;  %s1106_s8 = smov (!%p113_p7, %s540_s8), 0 }
  0x30   :  { %vm96_vm3 = vcmp.eq.s32.totalorder %v95_v10, 1  ;;  %p108_p9 = scmp.gt.s32.totalorder %s107_s10, 0  ;;  %p535_p10 = scmp.lt.s32.totalorder %s107_s10, 127 }
  0x31   :  { %v97_v11 = vsel %vm96_vm3, %v91_v8, %v93_v9  ;;  %s1110_s8 = smov (!%p541_p8, %s1106_s8), 7  ;;  %p133_p11 = scmp.lt.s32.totalorder %s829_s0, 128 }
  0x32   :  { %99 = vst.msk [vmem:[#allocation4 + $0x2] sm:$0x1] %vm44_vm0, %v97_v11  ;;  %s1108_s10 = smov (!%p108_p9, %s107_s10), 0  ;;  %s119_s12 = scalar_lea.vmem %s1077_s2, %s1110_s8 }
  0x33   :  { %s1112_s10 = smov (!%p535_p10, %s1108_s10), 127  ;;  %s552_s16 = sadd.s32 4294967168, %s829_s0  ;;  %v120_v13 = vld [vmem:[%s119_s12] sm:$0x1] }
  0x34   :  { %s117_s15 = scalar_lea.vmem %s1076_s1, %s1112_s10  ;;  %p140_p12 = scmp.gt.s32.totalorder %s552_s16, 0 }
  0x35   :  { %s121_s17 = scalar_select %p106_p6, 1, 0  ;;  %v118_v12 = vld [vmem:[%s117_s15] sm:$0x1] }
  0x36   :  { %s134_s28 = scalar_select %p133_p11, %s829_s0, 0 }
  0x37   :  { %v122_v14 = vstv %s121_s17  ;;  %p553_p13 = scmp.lt.s32.totalorder %s552_s16, 7  ;;  %s1114_s16 = smov (!%p140_p12, %s552_s16), 0 }
  0x38   :  { %vm123_vm4 = vcmp.eq.s32.totalorder %v122_v14, 1  ;;  %p135_p0 = scmp.gt.s32.totalorder %s134_s28, 0  ;;  %p547_p1 = scmp.lt.s32.totalorder %s134_s28, 127 }
  0x39   :  { %v124_v15 = vsel %vm123_vm4, %v118_v12, %v120_v13  ;;  %s1118_s16 = smov (!%p553_p13, %s1114_s16), 7  ;;  %p160_p2 = scmp.lt.s32.totalorder %s831_s21, 128 }
  0x3a   :  { %126 = vst.msk [vmem:[#allocation4 + $0x3] sm:$0x1] %vm44_vm0, %v124_v15  ;;  %s1116_s28 = smov (!%p135_p0, %s134_s28), 0  ;;  %s146_s18 = scalar_lea.vmem %s1077_s2, %s1118_s16 }
  0x3b   :  { %s1120_s28 = smov (!%p547_p1, %s1116_s28), 127  ;;  %s564_s6 = sadd.s32 4294967168, %s831_s21  ;;  %v147_v17 = vld [vmem:[%s146_s18] sm:$0x1] }
  0x3c   :  { %s144_s5 = scalar_lea.vmem %s1076_s1, %s1120_s28  ;;  %p167_p3 = scmp.gt.s32.totalorder %s564_s6, 0 }
  0x3d   :  { %s148_s7 = scalar_select %p133_p11, 1, 0  ;;  %v145_v16 = vld [vmem:[%s144_s5] sm:$0x1] }
  0x3e   :  { %s161_s8 = scalar_select %p160_p2, %s831_s21, 0 }
  0x3f   :  { %v149_v18 = vstv %s148_s7  ;;  %p565_p4 = scmp.lt.s32.totalorder %s564_s6, 7  ;;  %s1122_s6 = smov (!%p167_p3, %s564_s6), 0 }
  0x40   :  { %vm150_vm5 = vcmp.eq.s32.totalorder %v149_v18, 1  ;;  %p162_p5 = scmp.gt.s32.totalorder %s161_s8, 0  ;;  %p559_p6 = scmp.lt.s32.totalorder %s161_s8, 127 }
  0x41   :  { %v151_v19 = vsel %vm150_vm5, %v145_v16, %v147_v17  ;;  %s1126_s6 = smov (!%p565_p4, %s1122_s6), 7  ;;  %p187_p7 = scmp.lt.s32.totalorder %s833_s22, 128 }
  0x42   :  { %153 = vst.msk [vmem:[#allocation4 + $0x4] sm:$0x1] %vm44_vm0, %v151_v19  ;;  %s1124_s8 = smov (!%p162_p5, %s161_s8), 0  ;;  %s173_s10 = scalar_lea.vmem %s1077_s2, %s1126_s6 }
  0x43   :  { %s1128_s8 = smov (!%p559_p6, %s1124_s8), 127  ;;  %s576_s13 = sadd.s32 4294967168, %s833_s22  ;;  %v174_v21 = vld [vmem:[%s173_s10] sm:$0x1] }
  0x44   :  { %s171_s12 = scalar_lea.vmem %s1076_s1, %s1128_s8  ;;  %p194_p8 = scmp.gt.s32.totalorder %s576_s13, 0 }
  0x45   :  { %s175_s14 = scalar_select %p160_p2, 1, 0  ;;  %v172_v20 = vld [vmem:[%s171_s12] sm:$0x1] }
  0x46   :  { %s188_s15 = scalar_select %p187_p7, %s833_s22, 0 }
  0x47   :  { %v176_v22 = vstv %s175_s14  ;;  %p577_p9 = scmp.lt.s32.totalorder %s576_s13, 7  ;;  %s1130_s13 = smov (!%p194_p8, %s576_s13), 0 }
  0x48   :  { %vm177_vm6 = vcmp.eq.s32.totalorder %v176_v22, 1  ;;  %p189_p10 = scmp.gt.s32.totalorder %s188_s15, 0  ;;  %p571_p11 = scmp.lt.s32.totalorder %s188_s15, 127 }
  0x49   :  { %v178_v23 = vsel %vm177_vm6, %v172_v20, %v174_v21  ;;  %s1134_s13 = smov (!%p577_p9, %s1130_s13), 7  ;;  %p214_p12 = scmp.lt.s32.totalorder %s835_s23, 128 }
  0x4a   :  { %180 = vst.msk [vmem:[#allocation4 + $0x5] sm:$0x1] %vm44_vm0, %v178_v23  ;;  %s1132_s15 = smov (!%p189_p10, %s188_s15), 0  ;;  %s200_s17 = scalar_lea.vmem %s1077_s2, %s1134_s13 }
  0x4b   :  { %s1136_s15 = smov (!%p571_p11, %s1132_s15), 127  ;;  %s588_s18 = sadd.s32 4294967168, %s835_s23  ;;  %v201_v25 = vld [vmem:[%s200_s17] sm:$0x1] }
  0x4c   :  { %s198_s29 = scalar_lea.vmem %s1076_s1, %s1136_s15  ;;  %p221_p13 = scmp.gt.s32.totalorder %s588_s18, 0 }
  0x4d   :  { %s202_s30 = scalar_select %p187_p7, 1, 0  ;;  %v199_v24 = vld [vmem:[%s198_s29] sm:$0x1] }
  0x4e   :  { %s215_s4 = scalar_select %p214_p12, %s835_s23, 0 }
  0x4f   :  { %v203_v26 = vstv %s202_s30  ;;  %p589_p0 = scmp.lt.s32.totalorder %s588_s18, 7  ;;  %s1138_s18 = smov (!%p221_p13, %s588_s18), 0 }
  0x50   :  { %vm204_vm7 = vcmp.eq.s32.totalorder %v203_v26, 1  ;;  %p216_p1 = scmp.gt.s32.totalorder %s215_s4, 0  ;;  %p583_p2 = scmp.lt.s32.totalorder %s215_s4, 127 }
  0x51   :  { %v205_v27 = vsel %vm204_vm7, %v199_v24, %v201_v25  ;;  %s1142_s18 = smov (!%p589_p0, %s1138_s18), 7  ;;  %p241_p3 = scmp.lt.s32.totalorder %s837_s24, 128 }
  0x52   :  { %207 = vst.msk [vmem:[#allocation4 + $0x6] sm:$0x1] %vm44_vm0, %v205_v27  ;;  %s1140_s4 = smov (!%p216_p1, %s215_s4), 0  ;;  %s227_s6 = scalar_lea.vmem %s1077_s2, %s1142_s18 }
  0x53   :  { %s1144_s4 = smov (!%p583_p2, %s1140_s4), 127  ;;  %s600_s9 = sadd.s32 4294967168, %s837_s24  ;;  %v228_v29 = vld [vmem:[%s227_s6] sm:$0x1] }
  0x54   :  { %s225_s0 = scalar_lea.vmem %s1076_s1, %s1144_s4  ;;  %p248_p4 = scmp.gt.s32.totalorder %s600_s9, 0 }
  0x55   :  { %s229_s10 = scalar_select %p214_p12, 1, 0  ;;  %v226_v28 = vld [vmem:[%s225_s0] sm:$0x1] }
  0x56   :  { %s242_s19 = scalar_select %p241_p3, %s837_s24, 0 }
  0x57   :  { %v230_v30 = vstv %s229_s10  ;;  %p601_p5 = scmp.lt.s32.totalorder %s600_s9, 7  ;;  %s1146_s9 = smov (!%p248_p4, %s600_s9), 0 }
  0x58   :  { %vm231_vm8 = vcmp.eq.s32.totalorder %v230_v30, 1  ;;  %p243_p6 = scmp.gt.s32.totalorder %s242_s19, 0  ;;  %p595_p7 = scmp.lt.s32.totalorder %s242_s19, 127 }
  0x59   :  { %v232_v31 = vsel %vm231_vm8, %v226_v28, %v228_v29  ;;  %s1150_s9 = smov (!%p601_p5, %s1146_s9), 7  ;;  %p268_p8 = scmp.lt.s32.totalorder %s839_s25, 128 }
  0x5a   :  { %234 = vst.msk [vmem:[#allocation4 + $0x7] sm:$0x1] %vm44_vm0, %v232_v31  ;;  %s1148_s19 = smov (!%p243_p6, %s242_s19), 0  ;;  %s254_s12 = scalar_lea.vmem %s1077_s2, %s1150_s9 }
  0x5b   :  { %s1152_s19 = smov (!%p595_p7, %s1148_s19), 127  ;;  %s612_s21 = sadd.s32 4294967168, %s839_s25  ;;  %v255_v33 = vld [vmem:[%s254_s12] sm:$0x1] }
  0x5c   :  { %s252_s15 = scalar_lea.vmem %s1076_s1, %s1152_s19  ;;  %p275_p9 = scmp.gt.s32.totalorder %s612_s21, 0 }
  0x5d   :  { %s256_s16 = scalar_select %p241_p3, 1, 0  ;;  %v253_v32 = vld [vmem:[%s252_s15] sm:$0x1] }
  0x5e   :  { %s269_s17 = scalar_select %p268_p8, %s839_s25, 0 }
  0x5f   :  { %v257_v34 = vstv %s256_s16  ;;  %p613_p10 = scmp.lt.s32.totalorder %s612_s21, 7  ;;  %s1154_s21 = smov (!%p275_p9, %s612_s21), 0 }
  0x60   :  { %vm258_vm9 = vcmp.eq.s32.totalorder %v257_v34, 1  ;;  %p270_p11 = scmp.gt.s32.totalorder %s269_s17, 0  ;;  %p607_p12 = scmp.lt.s32.totalorder %s269_s17, 127 }
  0x61   :  { %v259_v35 = vsel %vm258_vm9, %v253_v32, %v255_v33  ;;  %s1158_s21 = smov (!%p613_p10, %s1154_s21), 7  ;;  %p295_p13 = scmp.lt.s32.totalorder %s841_s26, 128 }
  0x62   :  { %261 = vst.msk [vmem:[#allocation4 + $0x8] sm:$0x1] %vm44_vm0, %v259_v35  ;;  %s1156_s17 = smov (!%p270_p11, %s269_s17), 0  ;;  %s281_s20 = scalar_lea.vmem %s1077_s2, %s1158_s21 }
  0x63   :  { %s1160_s17 = smov (!%p607_p12, %s1156_s17), 127  ;;  %s624_s4 = sadd.s32 4294967168, %s841_s26  ;;  %v282_v37 = vld [vmem:[%s281_s20] sm:$0x1] }
  0x64   :  { %s279_s30 = scalar_lea.vmem %s1076_s1, %s1160_s17  ;;  %p302_p0 = scmp.gt.s32.totalorder %s624_s4, 0 }
  0x65   :  { %s283_s22 = scalar_select %p268_p8, 1, 0  ;;  %v280_v36 = vld [vmem:[%s279_s30] sm:$0x1] }
  0x66   :  { %s296_s5 = scalar_select %p295_p13, %s841_s26, 0 }
  0x67   :  { %v284_v38 = vstv %s283_s22  ;;  %p625_p1 = scmp.lt.s32.totalorder %s624_s4, 7  ;;  %s1162_s4 = smov (!%p302_p0, %s624_s4), 0 }
  0x68   :  { %vm285_vm10 = vcmp.eq.s32.totalorder %v284_v38, 1  ;;  %p297_p2 = scmp.gt.s32.totalorder %s296_s5, 0  ;;  %p619_p3 = scmp.lt.s32.totalorder %s296_s5, 127 }
  0x69   :  { %v286_v39 = vsel %vm285_vm10, %v280_v36, %v282_v37  ;;  %s1166_s4 = smov (!%p625_p1, %s1162_s4), 7  ;;  %p322_p4 = scmp.lt.s32.totalorder %s843_s27, 128 }
  0x6a   :  { %288 = vst.msk [vmem:[#allocation4 + $0x9] sm:$0x1] %vm44_vm0, %v286_v39  ;;  %s1164_s5 = smov (!%p297_p2, %s296_s5), 0  ;;  %s308_s7 = scalar_lea.vmem %s1077_s2, %s1166_s4 }
  0x6b   :  { %s1168_s5 = smov (!%p619_p3, %s1164_s5), 127  ;;  %s636_s10 = sadd.s32 4294967168, %s843_s27  ;;  %v309_v41 = vld [vmem:[%s308_s7] sm:$0x1] }
  0x6c   :  { %s306_s9 = scalar_lea.vmem %s1076_s1, %s1168_s5  ;;  %p329_p5 = scmp.gt.s32.totalorder %s636_s10, 0 }
  0x6d   :  { %s310_s19 = scalar_select %p295_p13, 1, 0  ;;  %v307_v40 = vld [vmem:[%s306_s9] sm:$0x1] }
  0x6e   :  { %s323_s23 = scalar_select %p322_p4, %s843_s27, 0 }
  0x6f   :  { %v311_v42 = vstv %s310_s19  ;;  %p637_p6 = scmp.lt.s32.totalorder %s636_s10, 7  ;;  %s1170_s10 = smov (!%p329_p5, %s636_s10), 0 }
  0x70   :  { %vm312_vm11 = vcmp.eq.s32.totalorder %v311_v42, 1  ;;  %p324_p7 = scmp.gt.s32.totalorder %s323_s23, 0  ;;  %p631_p8 = scmp.lt.s32.totalorder %s323_s23, 127 }
  0x71   :  { %v313_v43 = vsel %vm312_vm11, %v307_v40, %v309_v41  ;;  %s1174_s10 = smov (!%p637_p6, %s1170_s10), 7  ;;  %s642_s13 = sld [smem:[#allocation3 + $0xc]] }
  0x72   :  { %315 = vst.msk [vmem:[#allocation4 + $0xa] sm:$0x1] %vm44_vm0, %v313_v43  ;;  %s1172_s23 = smov (!%p324_p7, %s323_s23), 0  ;;  %s335_s12 = scalar_lea.vmem %s1077_s2, %s1174_s10 }
  0x73   :  { %s1176_s23 = smov (!%p631_p8, %s1172_s23), 127  ;;  %v336_v45 = vld [vmem:[%s335_s12] sm:$0x1]  ;;  %s1005_s17 = sld [smem:[#allocation3 + $0xd]] }
  0x74   :  { %s333_s21 = scalar_lea.vmem %s1076_s1, %s1176_s23  ;;  %s1007_s24 = sld [smem:[#allocation3 + $0xe]] }
  0x75   :  { %s337_s16 = scalar_select %p322_p4, 1, 0  ;;  %v334_v44 = vld [vmem:[%s333_s21] sm:$0x1] }
  0x76   :  { %s1009_s28 = sld [smem:[#allocation3 + $0xf]] }
  0x77   :  { %v338_v46 = vstv %s337_s16  ;;  %p349_p9 = scmp.lt.s32.totalorder %s642_s13, 128  ;;  %s648_s20 = sadd.s32 4294967168, %s642_s13 }
  0x78   :  { %vm339_vm12 = vcmp.eq.s32.totalorder %v338_v46, 1  ;;  %p356_p10 = scmp.gt.s32.totalorder %s648_s20, 0  ;;  %p649_p11 = scmp.lt.s32.totalorder %s648_s20, 7 }
  0x79   :  { %v340_v47 = vsel %vm339_vm12, %v334_v44, %v336_v45  ;;  %s350_s27 = scalar_select %p349_p9, %s642_s13, 0 }
  0x7a   :  { %342 = vst.msk [vmem:[#allocation4 + $0xb] sm:$0x1] %vm44_vm0, %v340_v47  ;;  %s1178_s20 = smov (!%p356_p10, %s648_s20), 0  ;;  %p376_p0 = scmp.lt.s32.totalorder %s1005_s17, 128 }
  0x7b   :  { %p351_p12 = scmp.gt.s32.totalorder %s350_s27, 0  ;;  %p643_p13 = scmp.lt.s32.totalorder %s350_s27, 127 }
  0x7c   :  { %s1180_s20 = smov (!%p649_p11, %s1178_s20), 7  ;;  %s660_s6 = sadd.s32 4294967168, %s1005_s17 }
  0x7d   :  { %s1182_s27 = smov (!%p351_p12, %s350_s27), 0  ;;  %s362_s30 = scalar_lea.vmem %s1077_s2, %s1180_s20 }
  0x7e   :  { %s1184_s27 = smov (!%p643_p13, %s1182_s27), 127  ;;  %v363_v48 = vld [vmem:[%s362_s30] sm:$0x1]  ;;  %p383_p1 = scmp.gt.s32.totalorder %s660_s6, 0 }
  0x7f   :  { %s364_s4 = scalar_select %p349_p9, 1, 0 }
  0x80   :  { %s360_s25 = scalar_lea.vmem %s1076_s1, %s1184_s27  ;;  %p661_p2 = scmp.lt.s32.totalorder %s660_s6, 7 }
  0x81   :  { %v361_v49 = vld [vmem:[%s360_s25] sm:$0x1]  ;;  %v365_v50 = vstv %s364_s4  ;;  %s377_s7 = scalar_select %p376_p0, %s1005_s17, 0 }
  0x82   :  { %vm366_vm13 = vcmp.eq.s32.totalorder %v365_v50, 1  ;;  %s1186_s6 = smov (!%p383_p1, %s660_s6), 0  ;;  %p403_p5 = scmp.lt.s32.totalorder %s1007_s24, 128 }
  0x83   :  { %v367_v51 = vsel %vm366_vm13, %v361_v49, %v363_v48  ;;  %p378_p3 = scmp.gt.s32.totalorder %s377_s7, 0  ;;  %p655_p4 = scmp.lt.s32.totalorder %s377_s7, 127 }
  0x84   :  { %369 = vst.msk [vmem:[#allocation4 + $0xc] sm:$0x1] %vm44_vm0, %v367_v51  ;;  %s1190_s6 = smov (!%p661_p2, %s1186_s6), 7  ;;  %s672_s26 = sadd.s32 4294967168, %s1007_s24 }
  0x85   :  { %s1188_s7 = smov (!%p378_p3, %s377_s7), 0  ;;  %s389_s9 = scalar_lea.vmem %s1077_s2, %s1190_s6 }
  0x86   :  { %s1192_s7 = smov (!%p655_p4, %s1188_s7), 127  ;;  %v390_v53 = vld [vmem:[%s389_s9] sm:$0x1]  ;;  %p410_p6 = scmp.gt.s32.totalorder %s672_s26, 0 }
  0x87   :  { %s387_s23 = scalar_lea.vmem %s1076_s1, %s1192_s7  ;;  %p673_p7 = scmp.lt.s32.totalorder %s672_s26, 7 }
  0x88   :  { %s391_s11 = scalar_select %p376_p0, 1, 0  ;;  %v388_v52 = vld [vmem:[%s387_s23] sm:$0x1] }
  0x89   :  { %s404_s12 = scalar_select %p403_p5, %s1007_s24, 0 }
  0x8a   :  { %v392_v54 = vstv %s391_s11  ;;  %s1194_s26 = smov (!%p410_p6, %s672_s26), 0  ;;  %p430_p10 = scmp.lt.s32.totalorder %s1009_s28, 128 }
  0x8b   :  { %vm393_vm14 = vcmp.eq.s32.totalorder %v392_v54, 1  ;;  %p405_p8 = scmp.gt.s32.totalorder %s404_s12, 0  ;;  %p667_p9 = scmp.lt.s32.totalorder %s404_s12, 127 }
  0x8c   :  { %v394_v55 = vsel %vm393_vm14, %v388_v52, %v390_v53  ;;  %s1198_s26 = smov (!%p673_p7, %s1194_s26), 7  ;;  %s684_s20 = sadd.s32 4294967168, %s1009_s28 }
  0x8d   :  { %396 = vst.msk [vmem:[#allocation4 + $0xd] sm:$0x1] %vm44_vm0, %v394_v55  ;;  %s1196_s12 = smov (!%p405_p8, %s404_s12), 0  ;;  %s416_s15 = scalar_lea.vmem %s1077_s2, %s1198_s26 }
  0x8e   :  { %s1200_s12 = smov (!%p667_p9, %s1196_s12), 127  ;;  %v417_v57 = vld [vmem:[%s416_s15] sm:$0x1]  ;;  %p437_p11 = scmp.gt.s32.totalorder %s684_s20, 0 }
  0x8f   :  { %s414_s17 = scalar_lea.vmem %s1076_s1, %s1200_s12  ;;  %p685_p12 = scmp.lt.s32.totalorder %s684_s20, 7 }
  0x90   :  { %s418_s27 = scalar_select %p403_p5, 1, 0  ;;  %v415_v56 = vld [vmem:[%s414_s17] sm:$0x1] }
  0x91   :  { %s431_s29 = scalar_select %p430_p10, %s1009_s28, 0 }
  0x92   :  { %v419_v58 = vstv %s418_s27  ;;  %s1202_s20 = smov (!%p437_p11, %s684_s20), 0  ;;  %s797_s25 = smov [#allocation4]  }
  0x93   :  { %vm420_vm15 = vcmp.eq.s32.totalorder %v419_v58, 1  ;;  %p432_p13 = scmp.gt.s32.totalorder %s431_s29, 0  ;;  %p679_p0 = scmp.lt.s32.totalorder %s431_s29, 127 }
  0x94   :  { %v421_v59 = vsel %vm420_vm15, %v415_v56, %v417_v57  ;;  %s1206_s20 = smov (!%p685_p12, %s1202_s20), 7  ;;  %s456_s6 = sshll.u32 %s797_s25, 4  ;;  %s457_s6 = int_to_ptr.vmem [resolvable:$true] %s456_s6 }
  0x95   :  { %423 = vst.msk [vmem:[#allocation4 + $0xe] sm:$0x1] %vm44_vm0, %v421_v59  ;;  %s1204_s29 = smov (!%p432_p13, %s431_s29), 0  ;;  %s443_s30 = scalar_lea.vmem %s1077_s2, %s1206_s20 }
  0x96   :  { %s1208_s29 = smov (!%p679_p0, %s1204_s29), 127  ;;  %v444_v61 = vld [vmem:[%s443_s30] sm:$0x1]  ;;  %s770_s8 = scalar_lea.vmem %s457_s6, 256 }
  0x97   :  { %s441_s5 = scalar_lea.vmem %s1076_s1, %s1208_s29  ;;  %p771_p1 = scmp.ne.s32.totalorder %s457_s6, %s770_s8 }
  0x98   :  { %s445_s7 = scalar_select %p430_p10, 1, 0  ;;  %v442_v60 = vld [vmem:[%s441_s5] sm:$0x1] }
  0x99   :  { %p775_p2 = scmp.lt.s32.totalorder %s457_s6, %s457_s6  ;;  %p776_p3 = scmp.lt.s32.totalorder %s770_s8, %s770_s8 }
  0x9a   :  { %v446_v62 = vstv %s445_s7 }
  0x9b   :  { %vm447_vm1 = vcmp.eq.s32.totalorder %v446_v62, 1  ;;  %p777_p4 = por %p776_p3, %p775_p2 }
  0x9c   :  { %v448_v63 = vsel %vm447_vm1, %v442_v60, %v444_v61 }
  0x9d   :  { %450 = vst.msk [vmem:[#allocation4 + $0xf] sm:$0x1] %vm44_vm0, %v448_v63  ;;  %p778_p5 = pnand %p777_p4, %p771_p1 }
  0x9f   :  { %781 = shalt.err (!%p778_p5)
}
  0xa0   :  { %s782_s28 = scalar_lea.hbm %s1078_s3, 256 }
  0xa1   :  { %p783_p6 = scmp.ne.s32.totalorder %s1078_s3, %s782_s28  ;;  %p786_p7 = scmp.lt.u32.totalorder %s782_s28, %s1078_s3 }
  0xa3   :  { %p788_p8 = pnand %p786_p7, %p783_p6 }
  0xa5   :  { %791 = shalt.err (!%p788_p8)
}
  0xa6   :  { %s798_s23 = smov 128   ;;  %s799_s26 = smov 8  }
  0xa7   :  { %462 = dma.vmem_to_hbm [thread:$0]  %s457_s6, 256, %s1078_s3, [#allocation5], %s798_s23, %s798_s23, %s799_s26  }
  0xa8   :  { %794 = dma.done.wait [#allocation5], 256  }
  0xa9   :  { %795 = vsyncadd [#allocation5], 4294967040 }
  0xaa   :  { %466 = vsyncpa [#allocation5], 1 }

</bundles_post_ra>
